<compile_context>
chip_gen: v6e
topology: v6e:2x2x1
jax: 0.10.0
libtpu: 0.0.40
codegen_flags: <defaults>
</compile_context>

<pallas_src>
import functools

import jax
import jax.numpy as jnp
from jax import lax
from jax.experimental import pallas as pl
from jax.experimental.pallas import tpu as pltpu

MASK_TOKEN_ID = 13
VOCAB_SIZE = 13
MASK_PROB = 0.15
IGNORE_INDEX = -100

# lowbias32 mixer constants (Chris Wellons) + golden-ratio seed scrambler.
_GOLDEN = 0x9E3779B9
_MIX_M1 = 0x7FEB352D
_MIX_M2 = 0x846CA68B
_MIX_C1 = 0x85EBCA6B

_ROW_TILE = 512          # rows per block in the lane-dense path (mult of 8 & 32)


def _mix32(x):
    """32-bit integer finalizer; x is uint32, all arithmetic wraps mod 2^32."""
    x = x ^ (x >> 16)
    x = x * jnp.uint32(_MIX_M1)
    x = x ^ (x >> 15)
    x = x * jnp.uint32(_MIX_M2)
    x = x ^ (x >> 16)
    return x


def _electra_mask_kernel(seed_ref, x_ref, masked_ref, mask_ref, labels_ref,
                         *, mask_prob, mask_token_id, ignore_index):
    x = x_ref[...]                                    # [TB, L] int32 token ids
    tb, lanes = x_ref.shape

    # Stateless counter-based RNG: hash(seed, global element index).
    # program_id offsets the row counter so every tile draws distinct randoms
    # and the result is independent of grid execution order / core sharding.
    row0 = pl.program_id(0) * tb
    rows = lax.broadcasted_iota(jnp.int32, (tb, lanes), 0) + row0
    cols = lax.broadcasted_iota(jnp.int32, (tb, lanes), 1)
    ctr = (rows * lanes + cols).astype(jnp.uint32)

    seed_u = seed_ref[0].astype(jnp.uint32)
    h = ctr ^ (seed_u * jnp.uint32(_GOLDEN))
    h = _mix32(h)
    h = _mix32(h ^ jnp.uint32(_MIX_C1))               # second round for quality

    # Exact integer Bernoulli(mask_prob): compare raw uniform bits vs threshold.
    threshold = jnp.uint32(int(round(mask_prob * float(1 << 32))))
    masked = h < threshold                            # [TB, L] bool

    masked_ref[...] = jnp.where(masked, jnp.int32(mask_token_id), x)
    mask_ref[...] = masked.astype(jnp.int8)           # 1 B/elem write
    labels_ref[...] = jnp.where(masked, x, jnp.int32(ignore_index))


def electra_mask_handler(x, seed,
                         mask_token_id=MASK_TOKEN_ID,
                         vocab_size=VOCAB_SIZE,
                         mask_prob=MASK_PROB,
                         ignore_index=IGNORE_INDEX):
    """Pallas implementation of ElectraMaskHandler.forward.

    Args:
      x:    [B, T] int32 token ids
      seed: (1,) int32 RNG seed

    Returns:
      (masked_input_ids [B,T] int32, masked_indices [B,T] bool, labels [B,T] int32)
    """
    del vocab_size  # reference forward never does random-token replacement
    B, T = x.shape
    n = B * T

    # Prefer a lane-dense (rows, 128*k) slab so stores are unmasked `vst`.
    lanes = None
    for cand in (512, 256, 128):
        if n % cand == 0:
            lanes = cand
            break

    if lanes is not None:
        rows = n // lanes
        x2d = x.reshape(rows, lanes)
        tb = _ROW_TILE if rows >= _ROW_TILE else rows   # full dim is always legal
        grid0 = pl.cdiv(rows, tb)
    else:
        # Tiny / ragged shapes: single whole-array block (block == array dims).
        rows, lanes = B, T
        x2d = x
        tb = rows
        grid0 = 1

    kernel = functools.partial(
        _electra_mask_kernel,
        mask_prob=mask_prob,
        mask_token_id=mask_token_id,
        ignore_index=ignore_index,
    )

    grid_spec = pltpu.PrefetchScalarGridSpec(
        num_scalar_prefetch=1,
        grid=(grid0,),
        in_specs=[
            pl.BlockSpec((tb, lanes), lambda i, seed_ref: (i, 0)),
        ],
        out_specs=[
            pl.BlockSpec((tb, lanes), lambda i, seed_ref: (i, 0)),
            pl.BlockSpec((tb, lanes), lambda i, seed_ref: (i, 0)),
            pl.BlockSpec((tb, lanes), lambda i, seed_ref: (i, 0)),
        ],
    )

    masked2d, mask2d, labels2d = pl.pallas_call(
        kernel,
        out_shape=(
            jax.ShapeDtypeStruct((rows, lanes), jnp.int32),
            jax.ShapeDtypeStruct((rows, lanes), jnp.int8),
            jax.ShapeDtypeStruct((rows, lanes), jnp.int32),
        ),
        grid_spec=grid_spec,
        compiler_params=pltpu.CompilerParams(
            # Row tiles are fully independent -> shard across both TCs on v7x.
            dimension_semantics=("parallel",),
            vmem_limit_bytes=32 * 1024 * 1024,
        ),
    )(seed, x2d)

    masked_ids = masked2d.reshape(B, T)
    masked_indices = mask2d.reshape(B, T).astype(jnp.bool_)
    labels = labels2d.reshape(B, T)
    return masked_ids, masked_indices, labels


if __name__ == "__main__":
    key = jax.random.PRNGKey(0)
    seed = jnp.array([0], dtype=jnp.int32)

    # Small shape matching the module spec, plus a lane-dense shape that
    # exercises the tiled/reshaped path.
    for (B, T) in [(2, 8), (64, 256)]:
        kx, key = jax.random.split(key)
        x = jax.random.randint(kx, (B, T), 0, VOCAB_SIZE, dtype=jnp.int32)

        masked_ids, masked_indices, labels = electra_mask_handler(x, seed)
        jax.block_until_ready((masked_ids, masked_indices, labels))

        assert masked_ids.shape == (B, T)
        assert labels.shape == (B, T)
        assert masked_indices.dtype == jnp.bool_

        mi = masked_indices
        # ELECTRA masking invariants.
        assert bool(jnp.all(jnp.where(mi, masked_ids == MASK_TOKEN_ID,
                                      masked_ids == x)))
        assert bool(jnp.all(jnp.where(mi, labels == x,
                                      labels == IGNORE_INDEX)))

        if B * T >= 4096:
            # Loose statistical check on the mask rate (sigma ~ 0.003 here).
            frac = float(jnp.mean(mi.astype(jnp.float32)))
            assert abs(frac - MASK_PROB) < 0.03, frac

    print("KERNEL_OK")
</pallas_src>

<mosaic_0001>
module attributes {stable_mosaic.version = 11 : i64} {
  func.func @_electra_mask_kernel(%arg0: i32, %arg1: memref<1xi32, #tpu.memory_space<smem>>, %arg2: memref<2x8xi32, #tpu.memory_space<vmem>>, %arg3: memref<2x8xi32, #tpu.memory_space<vmem>>, %arg4: memref<2x8xi8, #tpu.memory_space<vmem>>, %arg5: memref<2x8xi32, #tpu.memory_space<vmem>>) attributes {dimension_semantics = [#tpu.dimension_semantics<parallel>], iteration_bounds = array<i64: 1>, scalar_prefetch = 1 : i64, scratch_operands = 0 : i64, tpu.core_type = #tpu.core_type<tc>, window_params = [{transform_indices = @transform_0, window_bounds = array<i64: 2, 8>}, {transform_indices = @transform_1, window_bounds = array<i64: 2, 8>}, {transform_indices = @transform_2, window_bounds = array<i64: 2, 8>}, {transform_indices = @transform_3, window_bounds = array<i64: 2, 8>}]} {
    %c0 = arith.constant 0 : index
    %c0_0 = arith.constant 0 : index
    %0 = vector.load %arg2[%c0, %c0_0] : memref<2x8xi32, #tpu.memory_space<vmem>>, vector<2x8xi32>
    %c2_i32 = arith.constant 2 : i32
    %1 = arith.muli %arg0, %c2_i32 : i32
    %2 = tpu.iota {dimensions = array<i32: 0>} : vector<2x8xi32>
    %3 = vector.broadcast %1 : i32 to vector<2x8xi32>
    %4 = arith.addi %2, %3 : vector<2x8xi32>
    %5 = tpu.iota {dimensions = array<i32: 1>} : vector<2x8xi32>
    %c8_i32 = arith.constant 8 : i32
    %6 = vector.broadcast %c8_i32 : i32 to vector<2x8xi32>
    %7 = arith.muli %4, %6 : vector<2x8xi32>
    %8 = arith.addi %7, %5 : vector<2x8xi32>
    %c0_1 = arith.constant 0 : index
    %9 = memref.load %arg1[%c0_1] : memref<1xi32, #tpu.memory_space<smem>>
    %c-1640531527_i32 = arith.constant -1640531527 : i32
    %10 = arith.muli %9, %c-1640531527_i32 : i32
    %11 = vector.broadcast %10 : i32 to vector<2x8xi32>
    %12 = arith.xori %8, %11 : vector<2x8xi32>
    %c16_i32 = arith.constant 16 : i32
    %13 = vector.broadcast %c16_i32 : i32 to vector<2x8xi32>
    %14 = arith.shrui %12, %13 : vector<2x8xi32>
    %15 = arith.xori %12, %14 : vector<2x8xi32>
    %c2146121005_i32 = arith.constant 2146121005 : i32
    %16 = vector.broadcast %c2146121005_i32 : i32 to vector<2x8xi32>
    %17 = arith.muli %15, %16 : vector<2x8xi32>
    %c15_i32 = arith.constant 15 : i32
    %18 = vector.broadcast %c15_i32 : i32 to vector<2x8xi32>
    %19 = arith.shrui %17, %18 : vector<2x8xi32>
    %20 = arith.xori %17, %19 : vector<2x8xi32>
    %c-2073254261_i32 = arith.constant -2073254261 : i32
    %21 = vector.broadcast %c-2073254261_i32 : i32 to vector<2x8xi32>
    %22 = arith.muli %20, %21 : vector<2x8xi32>
    %c16_i32_2 = arith.constant 16 : i32
    %23 = vector.broadcast %c16_i32_2 : i32 to vector<2x8xi32>
    %24 = arith.shrui %22, %23 : vector<2x8xi32>
    %25 = arith.xori %22, %24 : vector<2x8xi32>
    %c-2048144789_i32 = arith.constant -2048144789 : i32
    %26 = vector.broadcast %c-2048144789_i32 : i32 to vector<2x8xi32>
    %27 = arith.xori %25, %26 : vector<2x8xi32>
    %c16_i32_3 = arith.constant 16 : i32
    %28 = vector.broadcast %c16_i32_3 : i32 to vector<2x8xi32>
    %29 = arith.shrui %27, %28 : vector<2x8xi32>
    %30 = arith.xori %27, %29 : vector<2x8xi32>
    %c2146121005_i32_4 = arith.constant 2146121005 : i32
    %31 = vector.broadcast %c2146121005_i32_4 : i32 to vector<2x8xi32>
    %32 = arith.muli %30, %31 : vector<2x8xi32>
    %c15_i32_5 = arith.constant 15 : i32
    %33 = vector.broadcast %c15_i32_5 : i32 to vector<2x8xi32>
    %34 = arith.shrui %32, %33 : vector<2x8xi32>
    %35 = arith.xori %32, %34 : vector<2x8xi32>
    %c-2073254261_i32_6 = arith.constant -2073254261 : i32
    %36 = vector.broadcast %c-2073254261_i32_6 : i32 to vector<2x8xi32>
    %37 = arith.muli %35, %36 : vector<2x8xi32>
    %c16_i32_7 = arith.constant 16 : i32
    %38 = vector.broadcast %c16_i32_7 : i32 to vector<2x8xi32>
    %39 = arith.shrui %37, %38 : vector<2x8xi32>
    %40 = arith.xori %37, %39 : vector<2x8xi32>
    %c644245094_i32 = arith.constant 644245094 : i32
    %41 = vector.broadcast %c644245094_i32 : i32 to vector<2x8xi32>
    %42 = arith.cmpi ult, %40, %41 : vector<2x8xi32>
    %c13_i32 = arith.constant 13 : i32
    %43 = vector.broadcast %c13_i32 : i32 to vector<2x8xi32>
    %44 = arith.select %42, %43, %0 : vector<2x8xi1>, vector<2x8xi32>
    %c0_8 = arith.constant 0 : index
    %c0_9 = arith.constant 0 : index
    %45 = vector.load %arg3[%c0_8, %c0_9] : memref<2x8xi32, #tpu.memory_space<vmem>>, vector<2x8xi32>
    tpu.vector_store %arg3[%c0_8, %c0_9], %44 {strides = array<i32>} : memref<2x8xi32, #tpu.memory_space<vmem>>, vector<2x8xi32>,
    %46 = arith.extui %42 : vector<2x8xi1> to vector<2x8xi8>
    %c0_10 = arith.constant 0 : index
    %c0_11 = arith.constant 0 : index
    %47 = vector.load %arg4[%c0_10, %c0_11] : memref<2x8xi8, #tpu.memory_space<vmem>>, vector<2x8xi8>
    tpu.vector_store %arg4[%c0_10, %c0_11], %46 {strides = array<i32>} : memref<2x8xi8, #tpu.memory_space<vmem>>, vector<2x8xi8>,
    %c-100_i32 = arith.constant -100 : i32
    %48 = vector.broadcast %c-100_i32 : i32 to vector<2x8xi32>
    %49 = arith.select %42, %0, %48 : vector<2x8xi1>, vector<2x8xi32>
    %c0_12 = arith.constant 0 : index
    %c0_13 = arith.constant 0 : index
    %50 = vector.load %arg5[%c0_12, %c0_13] : memref<2x8xi32, #tpu.memory_space<vmem>>, vector<2x8xi32>
    tpu.vector_store %arg5[%c0_12, %c0_13], %49 {strides = array<i32>} : memref<2x8xi32, #tpu.memory_space<vmem>>, vector<2x8xi32>,
    return
  }
  func.func @transform_0(%arg0: i32, %arg1: memref<1xi32, #tpu.memory_space<smem>>) -> (i32, i32) {
    %c0_i32 = arith.constant 0 : i32
    %c0_i32_0 = arith.constant 0 : i32
    return %arg0, %c0_i32 : i32, i32
  }
  func.func @transform_1(%arg0: i32, %arg1: memref<1xi32, #tpu.memory_space<smem>>) -> (i32, i32) {
    %c0_i32 = arith.constant 0 : i32
    %c0_i32_0 = arith.constant 0 : i32
    return %arg0, %c0_i32 : i32, i32
  }
  func.func @transform_2(%arg0: i32, %arg1: memref<1xi32, #tpu.memory_space<smem>>) -> (i32, i32) {
    %c0_i32 = arith.constant 0 : i32
    %c0_i32_0 = arith.constant 0 : i32
    return %arg0, %c0_i32 : i32, i32
  }
  func.func @transform_3(%arg0: i32, %arg1: memref<1xi32, #tpu.memory_space<smem>>) -> (i32, i32) {
    %c0_i32 = arith.constant 0 : i32
    %c0_i32_0 = arith.constant 0 : i32
    return %arg0, %c0_i32 : i32, i32
  }
}

</mosaic_0001>

<bundles_post_ra>
// kernel: tpu_custom_call.1
= control target key start
LH: loop header
LB: loop body
LE: loop exit
PB: predicated region body
PF: predicated region fallthrough
CT: control target
= control target key end

     0   :  { %11 = vsyncpa [#allocation5], 0  ;;  %v19_v0 = vlaneseq  ;;  %s222_s0 = inlined_call_operand.<no memory space> [shape: s32[1], index: 0, kind: input, shape index: {}]   ;;  %s223_s1 = inlined_call_operand.vmem [shape: s32[2,8], index: 1, kind: input, shape index: {}]   ;;  %s224_s2 = inlined_call_operand.hbm [shape: s32[2,8], index: 2, kind: output, shape index: {0}]   ;;  %s225_s3 = inlined_call_operand.hbm [shape: s8[2,8], index: 3, kind: output, shape index: {1}]   ;;  %s226_s4 = inlined_call_operand.hbm [shape: s32[2,8], index: 4, kind: output, shape index: {2}]  }
   0x1   :  { %s28_s17 = smul.u32 2654435769, %s222_s0 }
   0x2   :  { %v20_v1 = vshrl.u32 %v19_v0, 7  ;;  %v24_v2 = vand.u32 127, %v19_v0 }
   0x3   :  { %12 = vsyncpa [#allocation7], 0  ;;  %v29_v4 = vstv %s28_s17  ;;  %vm55_vm0 = vcmask 57344   ;;  %vm56_vm1 = vsmask.f32 256  ;;  %s172_s0 = smov [#allocation4]  }
   0x4   :  { %v25_v3 = vmul.u32 8, %v20_v1  ;;  %s69_s18 = sshll.u32 %s172_s0, 4  ;;  %v17_v24 = vld [vmem:[%s223_s1] sm:$0x3]  ;;  %vm50_vm2 = vcmask 58368   ;;  %s173_s21 = smov [#allocation6]   ;;  %vm207_vm4 = vmand %vm55_vm0, %vm56_vm1  ;;  %s70_s18 = int_to_ptr.vmem [resolvable:$true] %s69_s18 }
   0x5   :  { %s79_s22 = sshll.u32 %s173_s21, 4  ;;  %v58_v26 = vld [vmem:[#allocation6] sm:$0x1]  ;;  %s174_s23 = smov [#allocation8]   ;;  %v175_v29 = vmov 0   ;;  %s80_s22 = int_to_ptr.vmem [resolvable:$true] %s79_s22 }
   0x6   :  { %v26_v5 = vadd.s32 %v25_v3, %v24_v2  ;;  %s89_s24 = sshll.u32 %s174_s23, 4  ;;  %s108_s1 = scalar_lea.vmem %s70_s18, 32  ;;  %s90_s24 = int_to_ptr.vmem [resolvable:$true] %s89_s24 }
   0x7   :  { %p109_p0 = scmp.ne.s32.totalorder %s70_s18, %s108_s1  ;;  %p113_p1 = scmp.lt.s32.totalorder %s70_s18, %s70_s18 }
   0x8   :  { %v30_v6 = vxor.u32 %v29_v4, %v26_v5  ;;  %p114_p2 = scmp.lt.s32.totalorder %s108_s1, %s108_s1 }
   0xa   :  { %v31_v7 = vshrl.u32 %v30_v6, 16  ;;  %p115_p3 = por %p114_p2, %p113_p1 }
   0xc   :  { %v32_v8 = vxor.u32 %v31_v7, %v30_v6  ;;  %p116_p4 = pnand %p115_p3, %p109_p0 }
   0xe   :  { %v33_v9 = vmul.u32 2146121005, %v32_v8 }
  0x10   :  { %v34_v10 = vshrl.u32 %v33_v9, 15 }
  0x12   :  { %v35_v11 = vxor.u32 %v34_v10, %v33_v9 }
  0x14   :  { %v36_v12 = vmul.u32 2221713035, %v35_v11 }
  0x16   :  { %v37_v13 = vshrl.u32 %v36_v12, 16 }
  0x18   :  { %v38_v14 = vxor.u32 %v37_v13, %v36_v12 }
  0x1a   :  { %v39_v15 = vxor.u32 2246822507, %v38_v14 }
  0x1c   :  { %v40_v16 = vshrl.u32 %v39_v15, 16 }
  0x1e   :  { %v41_v17 = vxor.u32 %v40_v16, %v39_v15 }
  0x20   :  { %v42_v18 = vmul.u32 2146121005, %v41_v17 }
  0x22   :  { %v43_v19 = vshrl.u32 %v42_v18, 15 }
  0x24   :  { %v44_v20 = vxor.u32 %v43_v19, %v42_v18 }
  0x26   :  { %v45_v21 = vmul.u32 2221713035, %v44_v20 }
  0x28   :  { %v46_v22 = vshrl.u32 %v45_v21, 16 }
  0x2a   :  { %v47_v23 = vxor.u32 %v46_v22, %v45_v21 }
  0x2c   :  { %vm48_vm3 = vcmp.lt.u32.totalorder %v47_v23, 644245094 }
  0x2d   :  { %vm52_vm5 = vmpackc.low %vm48_vm3, %vm48_vm3  ;;  %v49_v27 = vsel %vm48_vm3, 13, %v17_v24  ;;  %v61_v28 = vsel %vm48_vm3, %v17_v24, 4294967196 }
  0x2e   :  { %vm53_vm6 = vmpackc.even %vm52_vm5, %vm52_vm5  ;;  %51 = vst.msk [vmem:[#allocation4] sm:$0x3] %vm50_vm2, %v49_v27 }
  0x2f   :  { %62 = vst.msk [vmem:[#allocation8] sm:$0x3] %vm50_vm2, %v61_v28  ;;  %v54_v30 = vsel %vm53_vm6, 16843009, %v175_v29 }
  0x30   :  { %119 = shalt.err (!%p116_p4)
}
  0x31   :  { %72 = dma.vmem_to_hbm [thread:$0]  %s70_s18, 32, %s224_s2, [#allocation5]   ;;  %v59_v31 = vsel %vm207_vm4, %v54_v30, %v58_v26 }
  0x32   :  { %60 = vst [vmem:[#allocation6] sm:$0x1] %v59_v31  ;;  %s128_s27 = scalar_lea.vmem %s80_s22, 16  ;;  %s132_s28 = scalar_lea.vmem %s80_s22, 32 }
  0x33   :  { %p129_p5 = scmp.ne.s32.totalorder %s80_s22, %s128_s27  ;;  %p133_p6 = scmp.lt.s32.totalorder %s80_s22, %s80_s22 }
  0x34   :  { %p134_p7 = scmp.lt.s32.totalorder %s132_s28, %s128_s27 }
  0x36   :  { %p135_p8 = por %p134_p7, %p133_p6 }
  0x38   :  { %p136_p9 = pnand %p135_p8, %p129_p5 }
  0x3a   :  { %139 = shalt.err (!%p136_p9)
}
  0x3b   :  { %82 = dma.vmem_to_hbm [thread:$0]  %s80_s22, 16, %s225_s3, [#allocation7]  }
  0x3c   :  { %s148_s5 = scalar_lea.vmem %s90_s24, 32  ;;  %p153_p11 = scmp.lt.s32.totalorder %s90_s24, %s90_s24 }
  0x3d   :  { %p149_p10 = scmp.ne.s32.totalorder %s90_s24, %s148_s5  ;;  %p154_p12 = scmp.lt.s32.totalorder %s148_s5, %s148_s5 }
  0x3f   :  { %p155_p13 = por %p154_p12, %p153_p11 }
  0x41   :  { %p156_p0 = pnand %p155_p13, %p149_p10 }
  0x43   :  { %159 = shalt.err (!%p156_p0)
}
  0x44   :  { %92 = dma.vmem_to_hbm [thread:$0]  %s90_s24, 32, %s226_s4, [#allocation7]  }
  0x45   :  { %168 = dma.done.wait [#allocation5], 32  }
  0x46   :  { %169 = vsyncadd [#allocation5], 4294967264 }
  0x47   :  { %170 = dma.done.wait [#allocation7], 48  }
  0x48   :  { %171 = vsyncadd [#allocation7], 4294967248 }
  0x49   :  { %102 = vsyncpa [#allocation5], 1 }
  0x4a   :  { %103 = vsyncpa [#allocation7], 1 }

</bundles_post_ra>
